<compile_context>
chip_gen: v7x
topology: tpu7x:2x2x1
jax: 0.10.0
libtpu: 0.0.40
codegen_flags: <defaults>
</compile_context>

<pallas_src>
import math

import jax
import jax.numpy as jnp
from jax.experimental import pallas as pl
from jax.experimental.pallas import tpu as pltpu

_NEG = -1e30  # finite -inf sentinel for masked scores


# ----------------------------------------------------------------------------
# Helpers
# ----------------------------------------------------------------------------
def _round_up(x: int, m: int) -> int:
    return (x + m - 1) // m * m


def _pick_row_tile(m: int) -> int:
    """Biggest row tile dividing m that still leaves >=2 grid steps (megacore)."""
    for cand in (2048, 1024, 512, 256, 128):
        if m % cand == 0 and m // cand >= 2:
            return cand
    return 128 if m % 128 == 0 else m


# ----------------------------------------------------------------------------
# Kernel 1: tiled matmul + bias (fused GATv2 lin_l | lin_r projection)
# ----------------------------------------------------------------------------
def _linear_kernel(x_ref, w_ref, b_ref, o_ref):
    y = jnp.dot(x_ref[...], w_ref[...], preferred_element_type=jnp.float32)
    o_ref[...] = (y + b_ref[...]).astype(o_ref.dtype)


def linear_pallas(x, w, b, *, tile_m=None):
    M, K = x.shape
    K2, N = w.shape
    assert K == K2, (x.shape, w.shape)
    b2 = jnp.asarray(b, jnp.float32).reshape(1, N)
    if tile_m is None:
        tile_m = _pick_row_tile(M)
    assert M % tile_m == 0
    cost = pl.CostEstimate(
        flops=2 * M * K * N,
        transcendentals=0,
        bytes_accessed=4 * (M * K + K * N + N + M * N),
    )
    return pl.pallas_call(
        _linear_kernel,
        out_shape=jax.ShapeDtypeStruct((M, N), jnp.float32),
        grid_spec=pltpu.PrefetchScalarGridSpec(
            num_scalar_prefetch=0,
            grid=(M // tile_m,),
            in_specs=[
                pl.BlockSpec((tile_m, K), lambda i: (i, 0)),   # activations tile
                pl.BlockSpec((K, N), lambda i: (0, 0)),        # weights (resident)
                pl.BlockSpec((1, N), lambda i: (0, 0)),        # bias (resident)
            ],
            out_specs=pl.BlockSpec((tile_m, N), lambda i: (i, 0)),
        ),
        compiler_params=pltpu.CompilerParams(dimension_semantics=("parallel",)),
        cost_estimate=cost,
    )(x.astype(jnp.float32), w.astype(jnp.float32), b2)


# ----------------------------------------------------------------------------
# Kernel 2: GATv2 attention (masked online softmax) + ELU + fused output Linear
# ----------------------------------------------------------------------------
def _make_gatv2_kernel(heads, channels, n_sub, sub_k, apply_elu):
    H, C, NS, SK = int(heads), int(channels), int(n_sub), int(sub_k)

    def kernel(nnz_ref, sgn_ref,                  # scalar-prefetch (SMEM)
               ur_ref, ult_ref, xl_ref, qlin_ref, klin_ref, adj_ref,
               gb_ref, wo_ref, bo_ref,
               o_ref,
               m_sc, l_sc, acc_sc):
        qi = pl.program_id(0)
        ki = pl.program_id(1)
        nk = pl.num_programs(1)

        @pl.when(ki == 0)
        def _init():
            m_sc[...] = jnp.full(m_sc.shape, _NEG, jnp.float32)
            l_sc[...] = jnp.zeros(l_sc.shape, jnp.float32)
            acc_sc[...] = jnp.zeros(acc_sc.shape, jnp.float32)

        # Block-sparsity skip: only process (q, k) blocks containing edges.
        @pl.when(nnz_ref[qi * nk + ki] > 0)
        def _compute():
            for s in range(NS):                              # 128-wide k sub-tiles
                ks = s * SK
                adj_s = adj_ref[:, ks:ks + SK].astype(jnp.float32)   # (TQ, SK)
                # Additive mask bias, computed once and shared by both heads.
                mbias = jnp.where(adj_s > 0.0, 0.0, _NEG)
                for h in range(H):
                    # Rank-1 (linear) part of the GATv2 score + mask bias.
                    e = (qlin_ref[:, h:h + 1]
                         + klin_ref[h:h + 1, ks:ks + SK]
                         + mbias)
                    # Sign-weighted ReLU part: channel loop over lane-dense
                    # (TQ, SK) tiles (add, max, scalar-mul, add on the VPU).
                    for c in range(C):
                        idx = h * C + c
                        col = ur_ref[:, idx:idx + 1]                 # (TQ, 1)
                        row = ult_ref[idx:idx + 1, ks:ks + SK]       # (1, SK)
                        r = jnp.maximum(col + row, 0.0)
                        e = e + r * sgn_ref[idx].astype(jnp.float32)

                    # Online (flash-style) masked softmax update for head h.
                    m_prev = m_sc[:, h:h + 1]
                    m_new = jnp.maximum(m_prev, jnp.max(e, axis=-1, keepdims=True))
                    alpha = jnp.exp(m_prev - m_new)
                    p = jnp.exp(e - m_new)
                    l_sc[:, h:h + 1] = (alpha * l_sc[:, h:h + 1]
                                        + jnp.sum(p, axis=-1, keepdims=True))
                    xl_h = xl_ref[ks:ks + SK, h * C:(h + 1) * C]     # (SK, C)
                    acc_sc[:, h * C:(h + 1) * C] = (
                        alpha * acc_sc[:, h * C:(h + 1) * C]
                        + jnp.dot(p, xl_h, preferred_element_type=jnp.float32))
                    m_sc[:, h:h + 1] = m_new

        @pl.when(ki == nk - 1)
        def _finalize():
            out = jnp.zeros((o_ref.shape[0], C), jnp.float32)
            for h in range(H):
                l = l_sc[:, h:h + 1]
                # Rows whose running max never left the sentinel had no edges
                # (or all their blocks were skipped) -> aggregate to zero.
                valid = m_sc[:, h:h + 1] > 0.5 * _NEG
                l_safe = jnp.where(l > 0.0, l, 1.0)
                out = out + jnp.where(valid,
                                      acc_sc[:, h * C:(h + 1) * C] / l_safe,
                                      0.0)
            out = out * (1.0 / H) + gb_ref[...]          # head mean + GAT bias
            if apply_elu:
                out = jnp.where(out > 0.0, out,
                                jnp.exp(jnp.minimum(out, 0.0)) - 1.0)   # ELU
            # Fused trailing nn.Linear (resident small weight in VMEM).
            y = (jnp.dot(out, wo_ref[...], preferred_element_type=jnp.float32)
                 + bo_ref[...])
            o_ref[...] = y.astype(o_ref.dtype)

    return kernel


def gatv2_layer_pallas(x, w_fused, b_fused, att, gat_bias, w_out, b_out,
                       adj, nnz, *, heads, channels, d_out, neg_slope=0.2,
                       tile_q=128, tile_k=256, apply_elu=True):
    """GATv2Conv(concat=False) + ELU + Linear(channels -> d_out), fused."""
    Np = x.shape[0]
    H, C = int(heads), int(channels)
    HC = H * C
    assert w_fused.shape == (x.shape[1], 2 * HC)
    assert w_out.shape == (C, d_out)
    assert Np % tile_q == 0 and Np % tile_k == 0 and tile_k % 128 == 0
    n_sub = tile_k // 128
    grid = (Np // tile_q, Np // tile_k)
    assert nnz.shape[0] == grid[0] * grid[1]

    # Fused lin_l | lin_r projection: one lane-dense (in, 2*H*C) MXU matmul.
    xlr = linear_pallas(x, w_fused, b_fused)     # (Np, 2*HC) f32
    x_l = xlr[:, :HC]                            # source-side (scores + values)
    x_r = xlr[:, HC:]                            # target-side (scores)

    a = jnp.asarray(att, jnp.float32)            # (H, C)
    a_flat = a.reshape(1, HC)
    # LeakyReLU positive-homogeneity split (see header): prescale folds
    # (1 - slope) * |a| into the ReLU operands; slope * (x.a) becomes rank-1.
    prescale = (1.0 - neg_slope) * jnp.abs(a_flat)
    ur = x_r * prescale                                              # (Np, HC)
    ult = (x_l * prescale).T                                         # (HC, Np)
    qlin = neg_slope * (x_r.reshape(Np, H, C) * a).sum(-1)           # (Np, H)
    klin_t = (neg_slope * (x_l.reshape(Np, H, C) * a).sum(-1)).T     # (H, Np)
    sgn = jnp.sign(a).astype(jnp.int32).reshape(HC)                  # SMEM table

    kern = _make_gatv2_kernel(H, C, n_sub, 128, apply_elu)
    cost = pl.CostEstimate(
        flops=int(H * Np * Np * (5 * C + 12) + 2 * Np * C * d_out),
        transcendentals=int(H * Np * Np),
        bytes_accessed=int(Np * Np + 4 * Np * (4 * HC + 2 * H) + 4 * Np * d_out),
    )

    return pl.pallas_call(
        kern,
        out_shape=jax.ShapeDtypeStruct((Np, d_out), jnp.float32),
        grid_spec=pltpu.PrefetchScalarGridSpec(
            num_scalar_prefetch=2,                # nnz table + sign table (SMEM)
            grid=grid,
            in_specs=[
                pl.BlockSpec((tile_q, HC), lambda qi, ki, nnz, sg: (qi, 0)),      # ur
                pl.BlockSpec((HC, tile_k), lambda qi, ki, nnz, sg: (0, ki)),      # ul^T
                pl.BlockSpec((tile_k, HC), lambda qi, ki, nnz, sg: (ki, 0)),      # x_l values
                pl.BlockSpec((tile_q, H), lambda qi, ki, nnz, sg: (qi, 0)),       # qlin
                pl.BlockSpec((H, tile_k), lambda qi, ki, nnz, sg: (0, ki)),       # klin^T
                pl.BlockSpec((tile_q, tile_k), lambda qi, ki, nnz, sg: (qi, ki)), # adj int8
                pl.BlockSpec((1, C), lambda qi, ki, nnz, sg: (0, 0)),             # GAT bias
                pl.BlockSpec((C, d_out), lambda qi, ki, nnz, sg: (0, 0)),         # fused W
                pl.BlockSpec((1, d_out), lambda qi, ki, nnz, sg: (0, 0)),         # fused b
            ],
            out_specs=pl.BlockSpec((tile_q, d_out), lambda qi, ki, nnz, sg: (qi, 0)),
            scratch_shapes=[
                pltpu.VMEM((tile_q, H), jnp.float32),    # running max (per head)
                pltpu.VMEM((tile_q, H), jnp.float32),    # running sum (per head)
                pltpu.VMEM((tile_q, HC), jnp.float32),   # lane-dense accumulators
            ],
        ),
        compiler_params=pltpu.CompilerParams(
            dimension_semantics=("parallel", "arbitrary")),
        cost_estimate=cost,
    )(nnz, sgn, ur, ult, x_l, qlin, klin_t, adj,
      jnp.asarray(gat_bias, jnp.float32).reshape(1, C),
      jnp.asarray(w_out, jnp.float32),
      jnp.asarray(b_out, jnp.float32).reshape(1, d_out))


# ----------------------------------------------------------------------------
# Full GAT_noncluster forward
# ----------------------------------------------------------------------------
def gat_noncluster_forward(features, edge_index, params, *, neg_slope=0.2):
    N = features.shape[0]
    Np = _round_up(N, 128)
    x = jnp.pad(jnp.asarray(features, jnp.float32), ((0, Np - N), (0, 0)))

    src = jnp.asarray(edge_index[0], jnp.int32)
    dst = jnp.asarray(edge_index[1], jnp.int32)
    # Dense adjacency mask adj[target, source] = 1 as int8 (4x less HBM traffic
    # than f32); padded rows/cols stay zero so padded nodes never contribute.
    adj = jnp.zeros((Np, Np), jnp.int8).at[dst, src].set(jnp.int8(1))

    # Tiles: tile_q = 128 keeps the parallel axis >= 2 steps (v7x megacore)
    # whenever Np >= 256; tile_k up to 512 amortizes per-grid-step overhead.
    tile_q = 128
    tile_k = 512 if Np % 512 == 0 else (256 if Np % 256 == 0 else 128)
    nq, nk = Np // tile_q, Np // tile_k

    # Per-(q-block, k-block) edge counts -> block-sparsity skip table (SMEM).
    bid = (dst // tile_q) * nk + (src // tile_k)
    nnz = jnp.zeros((nq * nk,), jnp.int32).at[bid].add(1)

    p = params
    heads = p["heads"]

    # Layer 1: GATv2(+ELU) fused with conv2 Linear  -> h2  (returned + re-used)
    h2 = gatv2_layer_pallas(x, p["w1"], p["b1_lin"], p["att1"], p["bias1"],
                            p["w2"], p["b2"], adj, nnz,
                            heads=heads, channels=p["c1"],
                            d_out=p["w2"].shape[1], neg_slope=neg_slope,
                            tile_q=tile_q, tile_k=tile_k)
    # Layer 2: GATv2(+ELU) fused with conv4 Linear  -> h4
    h4 = gatv2_layer_pallas(h2, p["w3"], p["b3_lin"], p["att3"], p["bias3"],
                            p["w4"], p["b4"], adj, nnz,
                            heads=heads, channels=p["c3"],
                            d_out=p["w4"].shape[1], neg_slope=neg_slope,
                            tile_q=tile_q, tile_k=tile_k)
    return h2[:N], h4[:N]


# ----------------------------------------------------------------------------
# Pure-JAX reference (matches the PyTorch forward, eval mode)
# ----------------------------------------------------------------------------
def _gatv2_ref(x, w_fused, b_fused, att, bias, adj, heads, channels,
               neg_slope=0.2, apply_elu=True):
    HIGH = jax.lax.Precision.HIGHEST
    HC = heads * channels
    xlr = jnp.dot(x, w_fused, precision=HIGH) + b_fused
    x_l = xlr[:, :HC].reshape(-1, heads, channels)   # source features
    x_r = xlr[:, HC:].reshape(-1, heads, channels)   # target features
    pair = x_r[:, None, :, :] + x_l[None, :, :, :]   # (N, N, H, C) [tgt, src]
    pair = jnp.where(pair > 0, pair, neg_slope * pair)
    e = jnp.einsum("ijhc,hc->ijh", pair, att, precision=HIGH)
    mask = (adj > 0)[:, :, None]
    e = jnp.where(mask, e, -jnp.inf)
    m = jnp.max(e, axis=1, keepdims=True)
    m = jnp.where(jnp.isfinite(m), m, 0.0)
    prob = jnp.where(mask, jnp.exp(e - m), 0.0)
    denom = jnp.sum(prob, axis=1, keepdims=True)
    alpha = prob / jnp.where(denom > 0, denom, 1.0)
    out = jnp.einsum("ijh,jhc->ihc", alpha, x_l, precision=HIGH)
    out = out.mean(axis=1) + bias
    if apply_elu:
        out = jax.nn.elu(out)
    return out


def reference_forward(features, edge_index, params, *, neg_slope=0.2):
    HIGH = jax.lax.Precision.HIGHEST
    N = features.shape[0]
    src, dst = edge_index[0], edge_index[1]
    adj = jnp.zeros((N, N), jnp.float32).at[dst, src].set(1.0)
    p = params
    h1 = _gatv2_ref(features, p["w1"], p["b1_lin"], p["att1"], p["bias1"], adj,
                    p["heads"], p["c1"], neg_slope, True)
    h2 = jnp.dot(h1, p["w2"], precision=HIGH) + p["b2"]
    h3 = _gatv2_ref(h2, p["w3"], p["b3_lin"], p["att3"], p["bias3"], adj,
                    p["heads"], p["c3"], neg_slope, True)
    h4 = jnp.dot(h3, p["w4"], precision=HIGH) + p["b4"]
    return h2, h4


# ----------------------------------------------------------------------------
# Demo
# ----------------------------------------------------------------------------
if __name__ == "__main__":
    key = jax.random.PRNGKey(0)
    keys = jax.random.split(key, 16)

    # Small shapes consistent with GAT_noncluster([32, 16, 16]):
    #   in_dim=32, num_hidden=16 -> hid = 2*16 = 32, out_dim=16, heads=2.
    N, in_dim, num_hidden, out_dim = 200, 32, 16, 16
    heads = 2
    hidden = 2 * num_hidden
    E = 1600

    features = jax.random.normal(keys[0], (N, in_dim), jnp.float32)
    src = jax.random.randint(keys[1], (E,), 0, N)
    dst = jax.random.randint(keys[2], (E,), 0, N)
    edge_index = jnp.stack([src, dst])    # row 0 = source, row 1 = target

    def glorot(k, shape):
        lim = math.sqrt(6.0 / (shape[0] + shape[1]))
        return jax.random.uniform(k, shape, jnp.float32, -lim, lim)

    params = {
        "heads": heads, "c1": hidden, "c3": hidden,
        # conv1: GATv2Conv(in_dim -> hidden, heads=2, concat=False, bias=True)
        "w1": glorot(keys[3], (in_dim, 2 * heads * hidden)),          # [lin_l | lin_r]
        "b1_lin": 0.05 * jax.random.normal(keys[4], (2 * heads * hidden,), jnp.float32),
        "att1": glorot(keys[5], (heads, hidden)),
        "bias1": 0.05 * jax.random.normal(keys[6], (hidden,), jnp.float32),
        # conv2: Linear(hidden -> out_dim)
        "w2": glorot(keys[7], (hidden, out_dim)),
        "b2": 0.05 * jax.random.normal(keys[8], (out_dim,), jnp.float32),
        # conv3: GATv2Conv(out_dim -> hidden, heads=2, concat=False, bias=True)
        "w3": glorot(keys[9], (out_dim, 2 * heads * hidden)),
        "b3_lin": 0.05 * jax.random.normal(keys[10], (2 * heads * hidden,), jnp.float32),
        "att3": glorot(keys[11], (heads, hidden)),
        "bias3": 0.05 * jax.random.normal(keys[12], (hidden,), jnp.float32),
        # conv4: Linear(hidden -> in_dim)
        "w4": glorot(keys[13], (hidden, in_dim)),
        "b4": 0.05 * jax.random.normal(keys[14], (in_dim,), jnp.float32),
    }

    h2, h4 = gat_noncluster_forward(features, edge_index, params)
    jax.block_until_ready((h2, h4))

    h2_ref, h4_ref = reference_forward(features, edge_index, params)

    assert h2.shape == (N, out_dim) and h4.shape == (N, in_dim)
    # Tolerance covers MXU f32 matmul decomposition, the score reassociation
    # (rank-1 + sign-weighted ReLU split) and online-softmax accumulation order.
    assert jnp.allclose(h2, h2_ref, atol=2e-3, rtol=2e-3), \
        float(jnp.max(jnp.abs(h2 - h2_ref)))
    assert jnp.allclose(h4, h4_ref, atol=2e-3, rtol=2e-3), \
        float(jnp.max(jnp.abs(h4 - h4_ref)))

    print("KERNEL_OK")
</pallas_src>

<mosaic_0001>
module attributes {stable_mosaic.version = 11 : i64} {
  func.func @_linear_kernel(%arg0: i32, %arg1: memref<128x32xf32, #tpu.memory_space<vmem>>, %arg2: memref<32x128xf32, #tpu.memory_space<vmem>>, %arg3: memref<1x128xf32, #tpu.memory_space<vmem>>, %arg4: memref<128x128xf32, #tpu.memory_space<vmem>>) attributes {dimension_semantics = [#tpu.dimension_semantics<parallel>], iteration_bounds = array<i64: 2>, scalar_prefetch = 0 : i64, scratch_operands = 0 : i64, tpu.core_type = #tpu.core_type<tc>, window_params = [{transform_indices = @transform_0, window_bounds = array<i64: 128, 32>}, {pipeline_mode = #tpu.pipeline_mode<synchronous>, transform_indices = @transform_1, window_bounds = array<i64: 32, 128>}, {pipeline_mode = #tpu.pipeline_mode<synchronous>, transform_indices = @transform_2, window_bounds = array<i64: 1, 128>}, {transform_indices = @transform_3, window_bounds = array<i64: 128, 128>}]} {
    %c0 = arith.constant 0 : index
    %c0_0 = arith.constant 0 : index
    %0 = vector.load %arg1[%c0, %c0_0] : memref<128x32xf32, #tpu.memory_space<vmem>>, vector<128x32xf32>
    %c0_1 = arith.constant 0 : index
    %c0_2 = arith.constant 0 : index
    %1 = vector.load %arg2[%c0_1, %c0_2] : memref<32x128xf32, #tpu.memory_space<vmem>>, vector<32x128xf32>
    %cst = arith.constant dense<0.000000e+00> : vector<128x128xf32>
    %2 = tpu.matmul %0, %1, %cst {dimension_numbers = #tpu.dot_dimension_numbers<[1], [0], [0], [1], [0, 0, 1, 1], [], []>} : vector<128x32xf32>, vector<32x128xf32>, vector<128x128xf32> -> vector<128x128xf32>
    %c0_3 = arith.constant 0 : index
    %c0_4 = arith.constant 0 : index
    %3 = vector.load %arg3[%c0_3, %c0_4] : memref<1x128xf32, #tpu.memory_space<vmem>>, vector<1x128xf32>
    %4 = vector.broadcast %3 : vector<1x128xf32> to vector<128x128xf32>
    %5 = arith.addf %2, %4 : vector<128x128xf32>
    %c0_5 = arith.constant 0 : index
    %c0_6 = arith.constant 0 : index
    %6 = vector.load %arg4[%c0_5, %c0_6] : memref<128x128xf32, #tpu.memory_space<vmem>>, vector<128x128xf32>
    tpu.vector_store %arg4[%c0_5, %c0_6], %5 {strides = array<i32>} : memref<128x128xf32, #tpu.memory_space<vmem>>, vector<128x128xf32>,
    return
  }
  func.func @transform_0(%arg0: i32) -> (i32, i32) {
    %c0_i32 = arith.constant 0 : i32
    %c0_i32_0 = arith.constant 0 : i32
    return %arg0, %c0_i32 : i32, i32
  }
  func.func @transform_1(%arg0: i32) -> (i32, i32) {
    %c0_i32 = arith.constant 0 : i32
    %c0_i32_0 = arith.constant 0 : i32
    %c0_i32_1 = arith.constant 0 : i32
    return %c0_i32, %c0_i32_0 : i32, i32
  }
  func.func @transform_2(%arg0: i32) -> (i32, i32) {
    %c0_i32 = arith.constant 0 : i32
    %c0_i32_0 = arith.constant 0 : i32
    %c0_i32_1 = arith.constant 0 : i32
    return %c0_i32, %c0_i32_0 : i32, i32
  }
  func.func @transform_3(%arg0: i32) -> (i32, i32) {
    %c0_i32 = arith.constant 0 : i32
    %c0_i32_0 = arith.constant 0 : i32
    return %arg0, %c0_i32 : i32, i32
  }
}

</mosaic_0001>

<bundles_post_ra>
// kernel: tpu_custom_call.1
= control target key start
LH: loop header
LB: loop body
LE: loop exit
PB: predicated region body
PF: predicated region fallthrough
CT: control target
= control target key end

     0   :  { %8 = vsyncpa [#allocation3], 0  ;;  %s881_s0 = inlined_call_operand.vmem [shape: f32[256,32], index: 0, kind: input, shape index: {}]   ;;  %s882_s1 = inlined_call_operand.vmem [shape: f32[32,128], index: 1, kind: input, shape index: {}]   ;;  %s883_s2 = inlined_call_operand.vmem [shape: f32[1,128], index: 2, kind: input, shape index: {}]   ;;  %s884_s3 = inlined_call_operand.hbm [shape: f32[256,128], index: 3, kind: output, shape index: {}]  }
   0x1   :  { %10 = vsyncpa [#allocation3 + $0x1], 0  ;;  %s707_s12 = smov 0   ;;  %s709_s13 = smov 0  }
   0x2   :  { %s711_s14 = smov 0   ;;  %s713_s15 = smov 0  }
   0x3 LB: > { %s728_s16 = sadd.s32 4294967295, %s682_s15   ;;  %s485_s17 = sadd.s32 4294967294, %s682_s15   ;;  %s682_s15 = sphi %s713_s15, %s890_s15   ;;  %s678_s14 = sphi %s711_s14, %s889_s14   ;;  %s674_s13 = sphi %s709_s13, %s888_s13   ;;  %s670_s12 = sphi %s707_s12, %s887_s12  }
   0x4   : > { %s732_s18 = sadd.s32 1, %s682_s15   ;;  %s91_s19 = sadd.s32 1, %s678_s14 }
   0x5   : > { %s88_s20 = ssub.s32 %s682_s15, %s732_s18  ;;  %p101_p0 = scmp.ne.s32.totalorder %s678_s14, %s674_s13 }
   0x6   : > { %p89_p1 = scmp.eq.s32.totalorder %s88_s20, 0  ;;  %p102_p2 = scmp.eq.s32.totalorder %s728_s16, 1 }
   0x7   : > { %p107_p3 = scmp.ne.s32.totalorder %s674_s13, %s670_s12  ;;  %p108_p4 = scmp.eq.s32.totalorder %s485_s17, 1 }
   0x8   : > { %s743_s21 = scalar_select %p89_p1, %s678_s14, %s91_s19  }
   0x9   : > { %p745_p5 = por %p102_p2, %p101_p0  ;;  %p749_p6 = por %p108_p4, %p107_p3 }
   0xa   : > { %p488_p7 = scmp.ge.s32.totalorder %s682_s15, 1  ;;  %p141_p8 = scmp.lt.s32.totalorder %s682_s15, 3 }
   0xc   : > { %p142_p9 = pnand %p488_p7, %p141_p8 }
   0xd   : > { %v188_v0 = vld [vmem:[%s882_s1] sm:$0xff] (!%p142_p9)  ;;  %v189_v1 = vld [vmem:[%s882_s1 + $0x8] sm:$0xff] (!%p142_p9)  ;;  %v190_v2 = vld [vmem:[%s882_s1 + $0x10] sm:$0xff] (!%p142_p9)  ;;  %s490_s30 = sshll.u32 (!%p142_p9), %s728_s16, 4  ;;  %vm199_vm0 = vcmask (!%p142_p9), 261120   ;;  %s162_s10 = sand.u32 (!%p142_p9), 1, %s674_s13  }
   0xe   : > { %145 = sbr.rel (%p142_p9) target bundleno = 269 (0x10d), region = 32  ;;  %v567_v3 = vpack.c.bf16 (!%p142_p9), %v189_v1, %v188_v0  ;;  %v191_v4 = vld [vmem:[%s882_s1 + $0x18] sm:$0xff] (!%p142_p9)  ;;  %p166_p10 = scmp.lt.s32.totalorder (!%p142_p9), %s490_s30, 31  ;;  %v492_v22 = vld [vmem:[%s883_s2] ss:$0 sm:$0xff] (!%p142_p9) }
   0xf   : > { %v571_v5 = vpack.c.bf16 (!%p142_p9), %v191_v4, %v190_v2  ;;  %s489_s11 = sshll.u32 (!%p142_p9), %s162_s10, 7  ;;  %s514_s24 = sshll.u32 (!%p142_p9), %s728_s16, 11 }
  0x10   : > { %568 = vmatprep.subr.bf16.mxu0 (!%p142_p9), %v567_v3  ;;  %575 = vmatprep.subr.bf16.mxu1 (!%p142_p9), %v567_v3  ;;  %s811_s20 = scalar_lea.vmem (!%p142_p9), [#allocation2], %s489_s11  ;;  %s830_s16 = scalar_lea.hbm (!%p142_p9), %s884_s3, %s514_s24 }
  0x11   : > { %570 = vmatpush3.bf16.msra.mxu0 (!%p142_p9), %v567_v3  ;;  %577 = vmatpush3.bf16.msra.mxu1 (!%p142_p9), %v567_v3  ;;  %s423_s25 = sshll.u32 (!%p142_p9), %s811_s20, 4  ;;  %s840_s28 = scalar_lea.sflag (!%p142_p9), [#allocation3], %s162_s10  ;;  %s832_s25 = int_to_ptr.vmem [resolvable:$true] %s423_s25 }
  0x12   : > { %572 = vmatprep.subr.bf16.mxu0 (!%p142_p9), %v571_v5  ;;  %576 = vmatprep.subr.bf16.mxu1 (!%p142_p9), %v571_v5  ;;  %s620_s29 = scalar_lea.vmem (!%p142_p9), %s832_s25, 2048 }
  0x13   : > { %p621_p11 = scmp.ne.s32.totalorder (!%p142_p9), %s832_s25, %s620_s29 }
  0x15   : > { %s892_s30 = smov (!%p166_p10, %s490_s30), 31  ;;  %574 = vmatpush3.bf16.msra.mxu0 %v571_v5  ;;  %578 = vmatpush3.bf16.msra.mxu1 %v571_v5  ;;  %p622_p12 = pnand %p621_p11, %p745_p5 }
  0x16   : > { %s491_s6 = sshll.u32 %s892_s30, 3  ;;  %s684_s30 = smov [#allocation2]  }
  0x17   : > { %s771_s9 = scalar_lea.vmem %s881_s0, %s491_s6  ;;  %p623_p13 = pneg %p622_p12 }
  0x18   : > { %v172_v6 = vld [vmem:[%s771_s9] sm:$0xff]  ;;  %v173_v8 = vld [vmem:[%s771_s9 + $0x8] sm:$0xff]  ;;  %v174_v10 = vld [vmem:[%s771_s9 + $0x10] sm:$0xff]  ;;  %s624_s4 = sshll.u32 %s684_s30, 4  ;;  %s625_s4 = int_to_ptr.vmem [resolvable:$false] %s624_s4 }
  0x19   : > { %v180_v7 = vld [vmem:[%s771_s9 + $0x40] sm:$0xff]  ;;  %v181_v9 = vld [vmem:[%s771_s9 + $0x48] sm:$0xff]  ;;  %543 = vmatprep.mubr.msk.f32.mxu0 %vm199_vm0, %v172_v6  ;;  %v182_v11 = vld [vmem:[%s771_s9 + $0x50] sm:$0xff]  ;;  %s626_s5 = scalar_lea.vmem %s625_s4, 4096  ;;  %p627_p0 = scmp.lt.s32.totalorder %s832_s25, %s625_s4 }
  0x1a   : > { %555 = vmatprep.mubr.msk.f32.mxu1 %vm199_vm0, %v180_v7  ;;  %544 = vmatmul.mubr.msk.f32.vlgmr.msra.gmra.mrb[0].mxu0 %vm199_vm0, %v173_v8  ;;  %v175_v12 = vld [vmem:[%s771_s9 + $0x18] sm:$0xff]  ;;  %v176_v14 = vld [vmem:[%s771_s9 + $0x20] sm:$0xff]  ;;  %v177_v16 = vld [vmem:[%s771_s9 + $0x28] sm:$0xff]  ;;  %p628_p1 = scmp.lt.s32.totalorder %s626_s5, %s620_s29 }
  0x1b   : > { %556 = vmatmul.mubr.msk.f32.vlgmr.msra.gmra.mrb[0].mxu1 %vm199_vm0, %v181_v9  ;;  %546 = vmatprep.mubr.msk.f32.mxu0 %vm199_vm0, %v174_v10  ;;  %v183_v13 = vld [vmem:[%s771_s9 + $0x58] sm:$0xff]  ;;  %v184_v15 = vld [vmem:[%s771_s9 + $0x60] sm:$0xff]  ;;  %v185_v17 = vld [vmem:[%s771_s9 + $0x68] sm:$0xff] }
  0x1c   : > { %558 = vmatprep.mubr.msk.f32.mxu1 %vm199_vm0, %v182_v11  ;;  %v178_v18 = vld [vmem:[%s771_s9 + $0x30] sm:$0xff]  ;;  %v179_v20 = vld [vmem:[%s771_s9 + $0x38] sm:$0xff]  ;;  %p629_p2 = por %p628_p1, %p627_p0 }
  0x1d   : > { %v186_v19 = vld [vmem:[%s771_s9 + $0x70] sm:$0xff]  ;;  %v187_v21 = vld [vmem:[%s771_s9 + $0x78] sm:$0xff] }
  0x1e   : > { %547 = vmatmul.mubr.msk.f32.gmra.mrb[2].mxu0 %vm199_vm0, %v175_v12  ;;  %p630_p3 = pnand %p629_p2, %p623_p13 }
  0x1f   : > { %559 = vmatmul.mubr.msk.f32.gmra.mrb[2].mxu1 %vm199_vm0, %v183_v13  ;;  %549 = vmatprep.mubr.msk.f32.mxu0 %vm199_vm0, %v176_v14 }
  0x20   : > { %561 = vmatprep.mubr.msk.f32.mxu1 %vm199_vm0, %v184_v15 }
  0x22   : > { %550 = vmatmul.mubr.msk.f32.gmra.mrb[4].mxu0 %vm199_vm0, %v177_v16 }
  0x23   : > { %562 = vmatmul.mubr.msk.f32.gmra.mrb[4].mxu1 %vm199_vm0, %v185_v17  ;;  %552 = vmatprep.mubr.msk.f32.mxu0 %vm199_vm0, %v178_v18 }
  0x24   : > { %564 = vmatprep.mubr.msk.f32.mxu1 %vm199_vm0, %v186_v19 }
  0x26   : > { %553 = vmatmul.mubr.msk.f32.gmra.mrb[6].mxu0 %vm199_vm0, %v179_v20 }
  0x27   : > { %565 = vmatmul.mubr.msk.f32.gmra.mrb[6].mxu1 %vm199_vm0, %v187_v21 }
  0xed   : > { %v545_v23 = vpop.f32.mrb[0].mxu0 }
  0xee   : > { %v557_v24 = vpop.f32.mrb[0].mxu1  ;;  %v320_v25 = vadd.f32 %v545_v23, %v492_v22  ;;  %v314_v27 = vpop.f32.mrb[1].mxu0 }
  0xef   : > { %v360_v26 = vadd.f32 %v557_v24, %v492_v22  ;;  %v354_v28 = vpop.f32.mrb[1].mxu1  ;;  %v315_v29 = vadd.f32 %v492_v22, %v314_v27 }
  0xf0   : > { %v355_v30 = vadd.f32 %v492_v22, %v354_v28  ;;  %394 = vst [vmem:[%s811_s20 + $0x8] sm:$0xff] %v320_v25 }
  0xf1   : > { %402 = vst [vmem:[%s811_s20 + $0x48] sm:$0xff] %v360_v26  ;;  %393 = vst [vmem:[%s811_s20] sm:$0xff] %v315_v29  ;;  %v548_v31 = vpop.f32.mrb[2].mxu0 }
  0xf2   : > { %401 = vst [vmem:[%s811_s20 + $0x40] sm:$0xff] %v355_v30  ;;  %v560_v32 = vpop.f32.mrb[2].mxu1  ;;  %v330_v33 = vadd.f32 %v548_v31, %v492_v22  ;;  %v324_v35 = vpop.f32.mrb[3].mxu0 }
  0xf3   : > { %v370_v34 = vadd.f32 %v560_v32, %v492_v22  ;;  %v364_v36 = vpop.f32.mrb[3].mxu1  ;;  %v325_v37 = vadd.f32 %v492_v22, %v324_v35 }
  0xf4   : > { %v365_v38 = vadd.f32 %v492_v22, %v364_v36  ;;  %396 = vst [vmem:[%s811_s20 + $0x18] sm:$0xff] %v330_v33 }
  0xf5   : > { %404 = vst [vmem:[%s811_s20 + $0x58] sm:$0xff] %v370_v34  ;;  %395 = vst [vmem:[%s811_s20 + $0x10] sm:$0xff] %v325_v37  ;;  %v551_v39 = vpop.f32.mrb[4].mxu0 }
  0xf6   : > { %403 = vst [vmem:[%s811_s20 + $0x50] sm:$0xff] %v365_v38  ;;  %v563_v40 = vpop.f32.mrb[4].mxu1  ;;  %v340_v41 = vadd.f32 %v551_v39, %v492_v22  ;;  %v334_v43 = vpop.f32.mrb[5].mxu0 }
  0xf7   : > { %v380_v42 = vadd.f32 %v563_v40, %v492_v22  ;;  %v374_v44 = vpop.f32.mrb[5].mxu1  ;;  %v335_v45 = vadd.f32 %v492_v22, %v334_v43 }
  0xf8   : > { %v375_v46 = vadd.f32 %v492_v22, %v374_v44  ;;  %398 = vst [vmem:[%s811_s20 + $0x28] sm:$0xff] %v340_v41 }
  0xf9   : > { %406 = vst [vmem:[%s811_s20 + $0x68] sm:$0xff] %v380_v42  ;;  %397 = vst [vmem:[%s811_s20 + $0x20] sm:$0xff] %v335_v45  ;;  %v554_v47 = vpop.f32.mrb[6].mxu0 }
  0xfa   : > { %405 = vst [vmem:[%s811_s20 + $0x60] sm:$0xff] %v375_v46  ;;  %v566_v48 = vpop.f32.mrb[6].mxu1  ;;  %v350_v49 = vadd.f32 %v554_v47, %v492_v22  ;;  %v344_v51 = vpop.f32.mrb[7].mxu0 }
  0xfb   : > { %v390_v50 = vadd.f32 %v566_v48, %v492_v22  ;;  %v384_v52 = vpop.f32.mrb[7].mxu1  ;;  %v345_v53 = vadd.f32 %v492_v22, %v344_v51 }
  0xfc   : > { %v385_v54 = vadd.f32 %v492_v22, %v384_v52  ;;  %400 = vst [vmem:[%s811_s20 + $0x38] sm:$0xff] %v350_v49 }
  0xfd   : > { %408 = vst [vmem:[%s811_s20 + $0x78] sm:$0xff] %v390_v50  ;;  %399 = vst [vmem:[%s811_s20 + $0x30] sm:$0xff] %v345_v53 }
  0xfe   : > { %407 = vst [vmem:[%s811_s20 + $0x70] sm:$0xff] %v385_v54 }
  0xff   : > { %633 = shalt.err (!%p630_p3)
}
 0x100   : > { %s634_s6 = scalar_lea.hbm %s830_s16, 2048  ;;  %s638_s9 = scalar_lea.hbm %s884_s3, 4096 }
 0x101   : > { %p635_p4 = scmp.ne.s32.totalorder %s830_s16, %s634_s6  ;;  %p639_p9 = scmp.lt.u32.totalorder %s830_s16, %s884_s3 }
 0x102   : > { %p640_p10 = scmp.lt.u32.totalorder %s638_s9, %s634_s6  ;;  %p642_p12 = scmp.lt.u32.totalorder %s634_s6, %s830_s16 }
 0x103   : > { %p636_p7 = pnand %p635_p4, %p745_p5 }
 0x104   : > { %p641_p11 = por %p640_p10, %p639_p9 }
 0x105   : > { %p637_p8 = pneg %p636_p7 }
 0x106   : > { %p643_p13 = por %p642_p12, %p641_p11 }
 0x108   : > { %p644_p0 = pnand %p643_p13, %p637_p8 }
 0x10a   : > { %647 = shalt.err (!%p644_p0)
}
 0x10b   : > { %s685_s17 = smov 128   ;;  %s686_s19 = smov 8  }
 0x10c   : > { %579 = dma.vmem_to_hbm [thread:$0]  (%p745_p5), %s832_s25, 2048, %s830_s16, %s840_s28, %s685_s17, %s685_s17, %s686_s19  }
 0x10d PF: > { %p585_p1 = scmp.ge.s32.totalorder %s682_s15, 2  ;;  %s438_s20 = sand.u32 1, %s670_s12  }
 0x10e   : > { %s439_s24 = scalar_lea.sflag [#allocation3], %s438_s20 }
 0x10f   : > { %p582_p2 = pnand %p585_p1, %p749_p6 }
 0x111   : > { %665 = dma.done.wait (!%p582_p2), %s439_s24, 2048  }
 0x112   : > { %667 = vsyncadd (!%p582_p2), %s439_s24, 4294965248  ;;  %p13_p3 = scmp.ge.s32.totalorder %s732_s18, 4   ;;  %s887_s12 = smov %s674_s13 }
 0x113   : > { %s888_s13 = smov %s678_s14  ;;  %s889_s14 = smov %s743_s21 }
 0x114   : > { %s890_s15 = smov %s732_s18  ;;  %15 = sbr.rel (!%p13_p3) target bundleno = 3 (0x3), region = 67 }
 0x11b   :  { %444 = vsyncpa [#allocation3], 1 }
 0x11c   :  { %446 = vsyncpa [#allocation3 + $0x1], 1 }

</bundles_post_ra>
